<compile_context>
chip_gen: v7x
topology: tpu7x:2x2x1
jax: 0.10.0
libtpu: 0.0.40
codegen_flags: <defaults>
</compile_context>

<pallas_src>
import functools

import jax
import jax.numpy as jnp
from jax.experimental import pallas as pl
from jax.experimental.pallas import tpu as pltpu

# ---- synthetic "param" module constants (module reads param.dt/dx/dy/N/eps) ----
DT = 1e-2
DX = 1.0
DY = 1.0
N_CONST = 1.0
EPS = 1e-6


def _log_with_mask(x):
    # torch: mat.masked_fill(mat < eps, eps); log(mat)
    return jnp.log(jnp.maximum(x, EPS))


def _periodic_laplacian(x, scale):
    """Periodic 5-point Laplacian per (H, W) slice of a (BT, H, W) block.

    Equivalent to circular-padded conv2d with [[0,1,0],[1,-4,1],[0,1,0]]
    divided by `scale` (= dx*dy).
    """
    H = x.shape[1]
    W = x.shape[2]
    up = pltpu.roll(x, 1, axis=1)
    dn = pltpu.roll(x, H - 1, axis=1)
    lf = pltpu.roll(x, 1, axis=2)
    rt = pltpu.roll(x, W - 1, axis=2)
    s = up + dn + lf + rt - 4.0 * x
    if scale == 1.0:          # trace-time decision: no divide-by-1.0 emitted
        return s
    return s * (1.0 / scale)


def _timestep_kernel(p_ref, cv_ref, ci_ref, eta_ref,
                     cvo_ref, cio_ref, etao_ref):
    t = pl.program_id(1)

    # Load the initial state from the HBM inputs only on the first fused time
    # step; for t > 0 the evolving fields live in the resident output VMEM
    # blocks (their block index does not change along the time axis).
    @pl.when(t == 0)
    def _():
        cvo_ref[...] = cv_ref[...]
        cio_ref[...] = ci_ref[...]
        etao_ref[...] = eta_ref[...]

    # scalar parameters in SMEM (already |.| + 0.001, derived scalars from the
    # wrapper)
    energy_v = p_ref[0]
    energy_i = p_ref[1]
    kBT = p_ref[2]
    kappa_v = p_ref[3]
    kappa_i = p_ref[4]
    kappa_eta = p_ref[5]
    c_v = p_ref[6]        # DT * diff_v / kBT
    c_i = p_ref[7]        # DT * diff_i / kBT
    neg_L_dt = p_ref[8]   # -DT * L

    cv = cvo_ref[...]
    ci = cio_ref[...]
    eta = etao_ref[...]

    # ---- stage-1 Laplacians (per field; no concat/slice copies) ----
    lap_cv = _periodic_laplacian(cv, DX * DY)
    lap_ci = _periodic_laplacian(ci, DX * DY)
    lap_eta = _periodic_laplacian(eta, DX * DY)

    # shared subexpressions
    eta_m1 = eta - 1.0
    cv_m1 = cv - 1.0
    cr = 1.0 - cv - ci
    t_v = kBT * _log_with_mask(cv)     # kBT * log(cv)
    t_i = kBT * _log_with_mask(ci)     # kBT * log(ci)
    t_r = kBT * _log_with_mask(cr)     # kBT * log(1 - cv - ci)
    # TODO(synk): on v6e/v7x the three logs could be evaluated in bf16 on the
    # EUP if profiling shows it saturated (never on v5e); kept f32 for accuracy.
    h = eta_m1 * eta_m1
    j = eta * eta

    # ---- eta chain first: retires fs, fv, lap_eta early ----
    fs = (energy_v * cv + energy_i * ci
          + cv * t_v + ci * t_i + cr * t_r)
    fv = cv_m1 * cv_m1 + ci * ci
    dF_deta = 2.0 * fs * eta_m1 + 2.0 * fv * eta - kappa_eta * lap_eta
    if N_CONST != 1.0:
        dF_deta = N_CONST * dF_deta
    etao_ref[...] = jnp.clip(eta + neg_L_dt * dF_deta, 0.0, 1.0)

    # ---- cv chain ----
    dfs_dcv = energy_v + t_v - t_r
    dF_dcv = h * dfs_dcv + j * (2.0 * cv_m1) - kappa_v * lap_cv
    lap2_cv = _periodic_laplacian(dF_dcv, 1.0)   # LaplacianOp default dx=dy=1
    # cv + dt*(diff_v*cv/kBT * lap)  ==  cv + (dt*diff_v/kBT)*cv*lap
    cvo_ref[...] = jnp.clip(cv + (c_v * cv) * lap2_cv, 0.0, 1.0)

    # ---- ci chain ----
    dfs_dci = energy_i + t_i - t_r
    dF_dci = h * dfs_dci + j * (2.0 * ci) - kappa_i * lap_ci
    lap2_ci = _periodic_laplacian(dF_dci, 1.0)
    cio_ref[...] = jnp.clip(ci + (c_i * ci) * lap2_ci, 0.0, 1.0)


def _pick_batch_tile(B, H, W, itemsize=4, budget_bytes=40 << 20):
    """Largest batch tile whose estimated VMEM working set fits the budget.

    Estimate: (3 in + 3 out) double-buffered blocks plus ~12 live full-tile
    temporaries -> ~24 block-sized buffers.  H and W are never tiled (the
    periodic Laplacian must wrap at the image boundary).  Prefer >=2 batch
    blocks so v7x can shard the parallel axis over both TensorCores and the
    I/O DMAs double-buffer against compute.
    """
    def footprint(bt):
        return 24 * bt * H * W * itemsize

    best = 1
    for bt in range(1, B + 1):
        if B % bt:
            continue
        if footprint(bt) > budget_bytes:
            continue
        if B > 1 and B // bt < 2:
            continue
        best = bt
    return best


@functools.partial(jax.jit, static_argnames=("num_steps",))
def irradiation_timesteps(params9, cv, ci, eta, *, num_steps=1):
    """Run `num_steps` fused timesteps in one pallas_call.

    params9: (9,) f32 of |param|+0.001 scalars; cv/ci/eta: (B, H, W) f32.
    num_steps=1 matches IrradiationSingleTimestep.forward exactly.
    """
    B, H, W = cv.shape

    # Precompute derived scalars (scalar XLA ops) so the kernel never issues
    # a full-block vector divide.
    energy_v, energy_i, kBT = params9[0], params9[1], params9[2]
    kappa_v, kappa_i, kappa_eta = params9[3], params9[4], params9[5]
    diff_v, diff_i, L = params9[6], params9[7], params9[8]
    kparams = jnp.stack([
        energy_v, energy_i, kBT, kappa_v, kappa_i, kappa_eta,
        DT * diff_v / kBT,        # c_v
        DT * diff_i / kBT,        # c_i
        -DT * L,                  # neg_L_dt
    ]).astype(jnp.float32)

    BT = _pick_batch_tile(B, H, W)
    num_bb = B // BT
    grid = (num_bb, num_steps)

    field_spec = pl.BlockSpec((BT, H, W), lambda b, t: (b, 0, 0))
    out_sd = jax.ShapeDtypeStruct((B, H, W), cv.dtype)

    block_bytes = BT * H * W * 4
    # explicit scoped-VMEM limit: enough for the working set, <= v7x physical
    vmem_limit = int(min(64 << 20, max(32 << 20, 32 * block_bytes)))

    return pl.pallas_call(
        _timestep_kernel,
        out_shape=(out_sd, out_sd, out_sd),
        grid=grid,
        in_specs=[
            pl.BlockSpec(memory_space=pltpu.MemorySpace.SMEM),  # 9 scalars
            field_spec, field_spec, field_spec,
        ],
        out_specs=(field_spec, field_spec, field_spec),
        # donate cv/ci/eta HBM buffers into the three outputs
        input_output_aliases={1: 0, 2: 1, 3: 2},
        compiler_params=pltpu.CompilerParams(
            dimension_semantics=("parallel", "arbitrary"),
            vmem_limit_bytes=vmem_limit),
    )(kparams, cv, ci, eta)


def irradiation_single_timestep(params9, cv, ci, eta):
    return irradiation_timesteps(params9, cv, ci, eta, num_steps=1)


def init_parameters(key):
    """Deterministic analogue of the nn.Parameter initialisations."""
    ks = jax.random.split(key, 9)
    energy_v0 = jax.random.normal(ks[0], (1,)) * 5.0 + 0.1
    energy_i0 = jax.random.normal(ks[1], (1,)) * 5.0 + 0.1
    kBT0 = jax.random.normal(ks[2], (1,)) * 5.0 + 0.1
    kappa_v0 = jax.random.normal(ks[3], (1,)) / 2.0 + 0.1
    kappa_i0 = jax.random.normal(ks[4], (1,)) / 2.0 + 0.1
    kappa_eta0 = jax.random.normal(ks[5], (1,)) / 2.0 + 0.1
    diff_v0 = jax.random.normal(ks[6], (1,)) / 2.0 + 0.1
    diff_i0 = jax.random.normal(ks[7], (1,)) / 2.0 + 0.1
    L0 = jax.random.normal(ks[8], (1,)) / 2.0 + 0.1
    raw = jnp.concatenate([energy_v0, energy_i0, kBT0, kappa_v0, kappa_i0,
                           kappa_eta0, diff_v0, diff_i0, L0]).astype(jnp.float32)
    # forward() always uses |p| + 0.001 — precompute this scalar glue here
    return jnp.abs(raw) + 0.001


def _reference_step(params9, cv, ci, eta):
    """Pure-jnp reference of the original torch forward (for a sanity check)."""
    energy_v, energy_i, kBT = params9[0], params9[1], params9[2]
    kappa_v, kappa_i, kappa_eta = params9[3], params9[4], params9[5]
    diff_v, diff_i, L = params9[6], params9[7], params9[8]

    def lap(x, dx=1.0, dy=1.0):
        return (jnp.roll(x, 1, axis=1) + jnp.roll(x, -1, axis=1)
                + jnp.roll(x, 1, axis=2) + jnp.roll(x, -1, axis=2)
                - 4.0 * x) / (dx * dy)

    def logm(x):
        return jnp.log(jnp.maximum(x, EPS))

    lap_cv = lap(cv, DX, DY)
    lap_ci = lap(ci, DX, DY)
    lap_eta = lap(eta, DX, DY)
    h = (eta - 1.0) ** 2
    j = eta ** 2
    cr = 1.0 - cv - ci
    fs = energy_v * cv + energy_i * ci + kBT * (
        cv * logm(cv) + ci * logm(ci) + cr * logm(cr))
    dfs_dcv = energy_v + kBT * (logm(cv) - logm(cr))
    dfs_dci = energy_i + kBT * (logm(ci) - logm(cr))
    fv = (cv - 1.0) ** 2 + ci ** 2
    dF_dcv = h * dfs_dcv + j * (2.0 * (cv - 1.0)) - kappa_v * lap_cv
    dF_dci = h * dfs_dci + j * (2.0 * ci) - kappa_i * lap_ci
    dF_deta = N_CONST * (fs * 2.0 * (eta - 1.0) + fv * 2.0 * eta
                         - kappa_eta * lap_eta)
    mv = diff_v * cv / kBT
    mi = diff_i * ci / kBT
    cv_new = cv + DT * (mv * lap(dF_dcv))
    ci_new = ci + DT * (mi * lap(dF_dci))
    eta_new = eta + DT * (-L * dF_deta)
    return (jnp.clip(cv_new, 0.0, 1.0), jnp.clip(ci_new, 0.0, 1.0),
            jnp.clip(eta_new, 0.0, 1.0))


if __name__ == "__main__":
    key = jax.random.PRNGKey(0)
    kp, kcv, kci, keta = jax.random.split(key, 4)

    params9 = init_parameters(kp)

    B, H, W = 2, 16, 128  # small batch of 2D grids; W=128 is lane-dense
    cv = jax.random.uniform(kcv, (B, H, W), jnp.float32, 0.01, 0.49)
    ci = jax.random.uniform(kci, (B, H, W), jnp.float32, 0.01, 0.49)
    eta = jax.random.uniform(keta, (B, H, W), jnp.float32, 0.0, 1.0)

    # references computed up-front (kernel call may alias the HBM buffers)
    cv_r1, ci_r1, eta_r1 = _reference_step(params9, cv, ci, eta)
    cv_r3, ci_r3, eta_r3 = cv, ci, eta
    for _ in range(3):
        cv_r3, ci_r3, eta_r3 = _reference_step(params9, cv_r3, ci_r3, eta_r3)

    # single timestep (== module forward)
    cv1, ci1, eta1 = irradiation_single_timestep(params9, cv, ci, eta)
    jax.block_until_ready((cv1, ci1, eta1))
    assert cv1.shape == (B, H, W) and ci1.shape == (B, H, W) \
        and eta1.shape == (B, H, W)
    assert jnp.allclose(cv1, cv_r1, rtol=1e-3, atol=1e-3)
    assert jnp.allclose(ci1, ci_r1, rtol=1e-3, atol=1e-3)
    assert jnp.allclose(eta1, eta_r1, rtol=1e-3, atol=1e-3)

    # fused multi-timestep path (fields stay resident in VMEM across steps)
    cv3, ci3, eta3 = irradiation_timesteps(params9, cv, ci, eta, num_steps=3)
    jax.block_until_ready((cv3, ci3, eta3))
    assert jnp.allclose(cv3, cv_r3, rtol=1e-3, atol=1e-3)
    assert jnp.allclose(ci3, ci_r3, rtol=1e-3, atol=1e-3)
    assert jnp.allclose(eta3, eta_r3, rtol=1e-3, atol=1e-3)

    print("KERNEL_OK")
</pallas_src>

<mosaic_0001>
module attributes {stable_mosaic.version = 11 : i64} {
  func.func @_timestep_kernel(%arg0: i32, %arg1: i32, %arg2: memref<9xf32, #tpu.memory_space<smem>>, %arg3: memref<1x16x128xf32, #tpu.memory_space<vmem>>, %arg4: memref<1x16x128xf32, #tpu.memory_space<vmem>>, %arg5: memref<1x16x128xf32, #tpu.memory_space<vmem>>, %arg6: memref<1x16x128xf32, #tpu.memory_space<vmem>>, %arg7: memref<1x16x128xf32, #tpu.memory_space<vmem>>, %arg8: memref<1x16x128xf32, #tpu.memory_space<vmem>>) attributes {dimension_semantics = [#tpu.dimension_semantics<parallel>, #tpu.dimension_semantics<arbitrary>], iteration_bounds = array<i64: 2, 1>, scalar_prefetch = 0 : i64, scratch_operands = 0 : i64, tpu.core_type = #tpu.core_type<tc>, window_params = [{transform_indices = @transform_0, window_bounds = array<i64: 9>}, {transform_indices = @transform_1, window_bounds = array<i64: 1, 16, 128>}, {transform_indices = @transform_2, window_bounds = array<i64: 1, 16, 128>}, {transform_indices = @transform_3, window_bounds = array<i64: 1, 16, 128>}, {transform_indices = @transform_4, window_bounds = array<i64: 1, 16, 128>}, {transform_indices = @transform_5, window_bounds = array<i64: 1, 16, 128>}, {transform_indices = @transform_6, window_bounds = array<i64: 1, 16, 128>}]} {
    %c0_i32 = arith.constant 0 : i32
    %0 = arith.cmpi eq, %arg1, %c0_i32 : i32
    %1 = arith.extui %0 : i1 to i32
    %c0_i32_0 = arith.constant 0 : i32
    %2 = arith.cmpi ne, %1, %c0_i32_0 : i32
    scf.if %2 {
      %c0_56 = arith.constant 0 : index
      %c0_57 = arith.constant 0 : index
      %c0_58 = arith.constant 0 : index
      %161 = vector.load %arg3[%c0_56, %c0_57, %c0_58] : memref<1x16x128xf32, #tpu.memory_space<vmem>>, vector<1x16x128xf32>
      %c0_59 = arith.constant 0 : index
      %c0_60 = arith.constant 0 : index
      %c0_61 = arith.constant 0 : index
      %162 = vector.load %arg6[%c0_59, %c0_60, %c0_61] : memref<1x16x128xf32, #tpu.memory_space<vmem>>, vector<1x16x128xf32>
      tpu.vector_store %arg6[%c0_59, %c0_60, %c0_61], %161 {strides = array<i32>} : memref<1x16x128xf32, #tpu.memory_space<vmem>>, vector<1x16x128xf32>,
      %c0_62 = arith.constant 0 : index
      %c0_63 = arith.constant 0 : index
      %c0_64 = arith.constant 0 : index
      %163 = vector.load %arg4[%c0_62, %c0_63, %c0_64] : memref<1x16x128xf32, #tpu.memory_space<vmem>>, vector<1x16x128xf32>
      %c0_65 = arith.constant 0 : index
      %c0_66 = arith.constant 0 : index
      %c0_67 = arith.constant 0 : index
      %164 = vector.load %arg7[%c0_65, %c0_66, %c0_67] : memref<1x16x128xf32, #tpu.memory_space<vmem>>, vector<1x16x128xf32>
      tpu.vector_store %arg7[%c0_65, %c0_66, %c0_67], %163 {strides = array<i32>} : memref<1x16x128xf32, #tpu.memory_space<vmem>>, vector<1x16x128xf32>,
      %c0_68 = arith.constant 0 : index
      %c0_69 = arith.constant 0 : index
      %c0_70 = arith.constant 0 : index
      %165 = vector.load %arg5[%c0_68, %c0_69, %c0_70] : memref<1x16x128xf32, #tpu.memory_space<vmem>>, vector<1x16x128xf32>
      %c0_71 = arith.constant 0 : index
      %c0_72 = arith.constant 0 : index
      %c0_73 = arith.constant 0 : index
      %166 = vector.load %arg8[%c0_71, %c0_72, %c0_73] : memref<1x16x128xf32, #tpu.memory_space<vmem>>, vector<1x16x128xf32>
      tpu.vector_store %arg8[%c0_71, %c0_72, %c0_73], %165 {strides = array<i32>} : memref<1x16x128xf32, #tpu.memory_space<vmem>>, vector<1x16x128xf32>,
    } else {
    }
    %c0 = arith.constant 0 : index
    %3 = memref.load %arg2[%c0] : memref<9xf32, #tpu.memory_space<smem>>
    %c1 = arith.constant 1 : index
    %4 = memref.load %arg2[%c1] : memref<9xf32, #tpu.memory_space<smem>>
    %c2 = arith.constant 2 : index
    %5 = memref.load %arg2[%c2] : memref<9xf32, #tpu.memory_space<smem>>
    %c3 = arith.constant 3 : index
    %6 = memref.load %arg2[%c3] : memref<9xf32, #tpu.memory_space<smem>>
    %c4 = arith.constant 4 : index
    %7 = memref.load %arg2[%c4] : memref<9xf32, #tpu.memory_space<smem>>
    %c5 = arith.constant 5 : index
    %8 = memref.load %arg2[%c5] : memref<9xf32, #tpu.memory_space<smem>>
    %c6 = arith.constant 6 : index
    %9 = memref.load %arg2[%c6] : memref<9xf32, #tpu.memory_space<smem>>
    %c7 = arith.constant 7 : index
    %10 = memref.load %arg2[%c7] : memref<9xf32, #tpu.memory_space<smem>>
    %c8 = arith.constant 8 : index
    %11 = memref.load %arg2[%c8] : memref<9xf32, #tpu.memory_space<smem>>
    %c0_1 = arith.constant 0 : index
    %c0_2 = arith.constant 0 : index
    %c0_3 = arith.constant 0 : index
    %12 = vector.load %arg6[%c0_1, %c0_2, %c0_3] : memref<1x16x128xf32, #tpu.memory_space<vmem>>, vector<1x16x128xf32>
    %c0_4 = arith.constant 0 : index
    %c0_5 = arith.constant 0 : index
    %c0_6 = arith.constant 0 : index
    %13 = vector.load %arg7[%c0_4, %c0_5, %c0_6] : memref<1x16x128xf32, #tpu.memory_space<vmem>>, vector<1x16x128xf32>
    %c0_7 = arith.constant 0 : index
    %c0_8 = arith.constant 0 : index
    %c0_9 = arith.constant 0 : index
    %14 = vector.load %arg8[%c0_7, %c0_8, %c0_9] : memref<1x16x128xf32, #tpu.memory_space<vmem>>, vector<1x16x128xf32>
    %c1_i32 = arith.constant 1 : i32
    %15 = tpu.dynamic_rotate %12 by %c1_i32 dim 1 : vector<1x16x128xf32>, i32 -> vector<1x16x128xf32>
    %c15_i32 = arith.constant 15 : i32
    %16 = tpu.dynamic_rotate %12 by %c15_i32 dim 1 : vector<1x16x128xf32>, i32 -> vector<1x16x128xf32>
    %c1_i32_10 = arith.constant 1 : i32
    %17 = tpu.dynamic_rotate %12 by %c1_i32_10 dim 2 : vector<1x16x128xf32>, i32 -> vector<1x16x128xf32>
    %c127_i32 = arith.constant 127 : i32
    %18 = tpu.dynamic_rotate %12 by %c127_i32 dim 2 : vector<1x16x128xf32>, i32 -> vector<1x16x128xf32>
    %19 = arith.addf %15, %16 : vector<1x16x128xf32>
    %20 = arith.addf %19, %17 : vector<1x16x128xf32>
    %21 = arith.addf %20, %18 : vector<1x16x128xf32>
    %cst = arith.constant 4.000000e+00 : f32
    %22 = vector.broadcast %cst : f32 to vector<1x16x128xf32>
    %23 = arith.mulf %22, %12 : vector<1x16x128xf32>
    %24 = arith.subf %21, %23 : vector<1x16x128xf32>
    %c1_i32_11 = arith.constant 1 : i32
    %25 = tpu.dynamic_rotate %13 by %c1_i32_11 dim 1 : vector<1x16x128xf32>, i32 -> vector<1x16x128xf32>
    %c15_i32_12 = arith.constant 15 : i32
    %26 = tpu.dynamic_rotate %13 by %c15_i32_12 dim 1 : vector<1x16x128xf32>, i32 -> vector<1x16x128xf32>
    %c1_i32_13 = arith.constant 1 : i32
    %27 = tpu.dynamic_rotate %13 by %c1_i32_13 dim 2 : vector<1x16x128xf32>, i32 -> vector<1x16x128xf32>
    %c127_i32_14 = arith.constant 127 : i32
    %28 = tpu.dynamic_rotate %13 by %c127_i32_14 dim 2 : vector<1x16x128xf32>, i32 -> vector<1x16x128xf32>
    %29 = arith.addf %25, %26 : vector<1x16x128xf32>
    %30 = arith.addf %29, %27 : vector<1x16x128xf32>
    %31 = arith.addf %30, %28 : vector<1x16x128xf32>
    %cst_15 = arith.constant 4.000000e+00 : f32
    %32 = vector.broadcast %cst_15 : f32 to vector<1x16x128xf32>
    %33 = arith.mulf %32, %13 : vector<1x16x128xf32>
    %34 = arith.subf %31, %33 : vector<1x16x128xf32>
    %c1_i32_16 = arith.constant 1 : i32
    %35 = tpu.dynamic_rotate %14 by %c1_i32_16 dim 1 : vector<1x16x128xf32>, i32 -> vector<1x16x128xf32>
    %c15_i32_17 = arith.constant 15 : i32
    %36 = tpu.dynamic_rotate %14 by %c15_i32_17 dim 1 : vector<1x16x128xf32>, i32 -> vector<1x16x128xf32>
    %c1_i32_18 = arith.constant 1 : i32
    %37 = tpu.dynamic_rotate %14 by %c1_i32_18 dim 2 : vector<1x16x128xf32>, i32 -> vector<1x16x128xf32>
    %c127_i32_19 = arith.constant 127 : i32
    %38 = tpu.dynamic_rotate %14 by %c127_i32_19 dim 2 : vector<1x16x128xf32>, i32 -> vector<1x16x128xf32>
    %39 = arith.addf %35, %36 : vector<1x16x128xf32>
    %40 = arith.addf %39, %37 : vector<1x16x128xf32>
    %41 = arith.addf %40, %38 : vector<1x16x128xf32>
    %cst_20 = arith.constant 4.000000e+00 : f32
    %42 = vector.broadcast %cst_20 : f32 to vector<1x16x128xf32>
    %43 = arith.mulf %42, %14 : vector<1x16x128xf32>
    %44 = arith.subf %41, %43 : vector<1x16x128xf32>
    %cst_21 = arith.constant 1.000000e+00 : f32
    %45 = vector.broadcast %cst_21 : f32 to vector<1x16x128xf32>
    %46 = arith.subf %14, %45 : vector<1x16x128xf32>
    %cst_22 = arith.constant 1.000000e+00 : f32
    %47 = vector.broadcast %cst_22 : f32 to vector<1x16x128xf32>
    %48 = arith.subf %12, %47 : vector<1x16x128xf32>
    %cst_23 = arith.constant 1.000000e+00 : f32
    %49 = vector.broadcast %cst_23 : f32 to vector<1x16x128xf32>
    %50 = arith.subf %49, %12 : vector<1x16x128xf32>
    %51 = arith.subf %50, %13 : vector<1x16x128xf32>
    %cst_24 = arith.constant 9.99999997E-7 : f32
    %52 = vector.broadcast %cst_24 : f32 to vector<1x16x128xf32>
    %53 = arith.maximumf %12, %52 : vector<1x16x128xf32>
    %54 = math.log %53 : vector<1x16x128xf32>
    %55 = vector.broadcast %5 : f32 to vector<1x16x128xf32>
    %56 = arith.mulf %55, %54 : vector<1x16x128xf32>
    %cst_25 = arith.constant 9.99999997E-7 : f32
    %57 = vector.broadcast %cst_25 : f32 to vector<1x16x128xf32>
    %58 = arith.maximumf %13, %57 : vector<1x16x128xf32>
    %59 = math.log %58 : vector<1x16x128xf32>
    %60 = vector.broadcast %5 : f32 to vector<1x16x128xf32>
    %61 = arith.mulf %60, %59 : vector<1x16x128xf32>
    %cst_26 = arith.constant 9.99999997E-7 : f32
    %62 = vector.broadcast %cst_26 : f32 to vector<1x16x128xf32>
    %63 = arith.maximumf %51, %62 : vector<1x16x128xf32>
    %64 = math.log %63 : vector<1x16x128xf32>
    %65 = vector.broadcast %5 : f32 to vector<1x16x128xf32>
    %66 = arith.mulf %65, %64 : vector<1x16x128xf32>
    %67 = arith.mulf %46, %46 : vector<1x16x128xf32>
    %68 = arith.mulf %14, %14 : vector<1x16x128xf32>
    %69 = vector.broadcast %3 : f32 to vector<1x16x128xf32>
    %70 = arith.mulf %69, %12 : vector<1x16x128xf32>
    %71 = vector.broadcast %4 : f32 to vector<1x16x128xf32>
    %72 = arith.mulf %71, %13 : vector<1x16x128xf32>
    %73 = arith.addf %70, %72 : vector<1x16x128xf32>
    %74 = arith.mulf %12, %56 : vector<1x16x128xf32>
    %75 = arith.addf %73, %74 : vector<1x16x128xf32>
    %76 = arith.mulf %13, %61 : vector<1x16x128xf32>
    %77 = arith.addf %75, %76 : vector<1x16x128xf32>
    %78 = arith.mulf %51, %66 : vector<1x16x128xf32>
    %79 = arith.addf %77, %78 : vector<1x16x128xf32>
    %80 = arith.mulf %48, %48 : vector<1x16x128xf32>
    %81 = arith.mulf %13, %13 : vector<1x16x128xf32>
    %82 = arith.addf %80, %81 : vector<1x16x128xf32>
    %cst_27 = arith.constant 2.000000e+00 : f32
    %83 = vector.broadcast %cst_27 : f32 to vector<1x16x128xf32>
    %84 = arith.mulf %83, %79 : vector<1x16x128xf32>
    %85 = arith.mulf %84, %46 : vector<1x16x128xf32>
    %cst_28 = arith.constant 2.000000e+00 : f32
    %86 = vector.broadcast %cst_28 : f32 to vector<1x16x128xf32>
    %87 = arith.mulf %86, %82 : vector<1x16x128xf32>
    %88 = arith.mulf %87, %14 : vector<1x16x128xf32>
    %89 = arith.addf %85, %88 : vector<1x16x128xf32>
    %90 = vector.broadcast %8 : f32 to vector<1x16x128xf32>
    %91 = arith.mulf %90, %44 : vector<1x16x128xf32>
    %92 = arith.subf %89, %91 : vector<1x16x128xf32>
    %93 = vector.broadcast %11 : f32 to vector<1x16x128xf32>
    %94 = arith.mulf %93, %92 : vector<1x16x128xf32>
    %95 = arith.addf %14, %94 : vector<1x16x128xf32>
    %cst_29 = arith.constant 0.000000e+00 : f32
    %cst_30 = arith.constant 1.000000e+00 : f32
    %96 = vector.broadcast %cst_29 : f32 to vector<1x16x128xf32>
    %97 = arith.maximumf %96, %95 : vector<1x16x128xf32>
    %98 = vector.broadcast %cst_30 : f32 to vector<1x16x128xf32>
    %99 = arith.minimumf %98, %97 : vector<1x16x128xf32>
    %c0_31 = arith.constant 0 : index
    %c0_32 = arith.constant 0 : index
    %c0_33 = arith.constant 0 : index
    %100 = vector.load %arg8[%c0_31, %c0_32, %c0_33] : memref<1x16x128xf32, #tpu.memory_space<vmem>>, vector<1x16x128xf32>
    tpu.vector_store %arg8[%c0_31, %c0_32, %c0_33], %99 {strides = array<i32>} : memref<1x16x128xf32, #tpu.memory_space<vmem>>, vector<1x16x128xf32>,
    %101 = vector.broadcast %3 : f32 to vector<1x16x128xf32>
    %102 = arith.addf %101, %56 : vector<1x16x128xf32>
    %103 = arith.subf %102, %66 : vector<1x16x128xf32>
    %104 = arith.mulf %67, %103 : vector<1x16x128xf32>
    %cst_34 = arith.constant 2.000000e+00 : f32
    %105 = vector.broadcast %cst_34 : f32 to vector<1x16x128xf32>
    %106 = arith.mulf %105, %48 : vector<1x16x128xf32>
    %107 = arith.mulf %68, %106 : vector<1x16x128xf32>
    %108 = arith.addf %104, %107 : vector<1x16x128xf32>
    %109 = vector.broadcast %6 : f32 to vector<1x16x128xf32>
    %110 = arith.mulf %109, %24 : vector<1x16x128xf32>
    %111 = arith.subf %108, %110 : vector<1x16x128xf32>
    %c1_i32_35 = arith.constant 1 : i32
    %112 = tpu.dynamic_rotate %111 by %c1_i32_35 dim 1 : vector<1x16x128xf32>, i32 -> vector<1x16x128xf32>
    %c15_i32_36 = arith.constant 15 : i32
    %113 = tpu.dynamic_rotate %111 by %c15_i32_36 dim 1 : vector<1x16x128xf32>, i32 -> vector<1x16x128xf32>
    %c1_i32_37 = arith.constant 1 : i32
    %114 = tpu.dynamic_rotate %111 by %c1_i32_37 dim 2 : vector<1x16x128xf32>, i32 -> vector<1x16x128xf32>
    %c127_i32_38 = arith.constant 127 : i32
    %115 = tpu.dynamic_rotate %111 by %c127_i32_38 dim 2 : vector<1x16x128xf32>, i32 -> vector<1x16x128xf32>
    %116 = arith.addf %112, %113 : vector<1x16x128xf32>
    %117 = arith.addf %116, %114 : vector<1x16x128xf32>
    %118 = arith.addf %117, %115 : vector<1x16x128xf32>
    %cst_39 = arith.constant 4.000000e+00 : f32
    %119 = vector.broadcast %cst_39 : f32 to vector<1x16x128xf32>
    %120 = arith.mulf %119, %111 : vector<1x16x128xf32>
    %121 = arith.subf %118, %120 : vector<1x16x128xf32>
    %122 = vector.broadcast %9 : f32 to vector<1x16x128xf32>
    %123 = arith.mulf %122, %12 : vector<1x16x128xf32>
    %124 = arith.mulf %123, %121 : vector<1x16x128xf32>
    %125 = arith.addf %12, %124 : vector<1x16x128xf32>
    %cst_40 = arith.constant 0.000000e+00 : f32
    %cst_41 = arith.constant 1.000000e+00 : f32
    %126 = vector.broadcast %cst_40 : f32 to vector<1x16x128xf32>
    %127 = arith.maximumf %126, %125 : vector<1x16x128xf32>
    %128 = vector.broadcast %cst_41 : f32 to vector<1x16x128xf32>
    %129 = arith.minimumf %128, %127 : vector<1x16x128xf32>
    %c0_42 = arith.constant 0 : index
    %c0_43 = arith.constant 0 : index
    %c0_44 = arith.constant 0 : index
    %130 = vector.load %arg6[%c0_42, %c0_43, %c0_44] : memref<1x16x128xf32, #tpu.memory_space<vmem>>, vector<1x16x128xf32>
    tpu.vector_store %arg6[%c0_42, %c0_43, %c0_44], %129 {strides = array<i32>} : memref<1x16x128xf32, #tpu.memory_space<vmem>>, vector<1x16x128xf32>,
    %131 = vector.broadcast %4 : f32 to vector<1x16x128xf32>
    %132 = arith.addf %131, %61 : vector<1x16x128xf32>
    %133 = arith.subf %132, %66 : vector<1x16x128xf32>
    %134 = arith.mulf %67, %133 : vector<1x16x128xf32>
    %cst_45 = arith.constant 2.000000e+00 : f32
    %135 = vector.broadcast %cst_45 : f32 to vector<1x16x128xf32>
    %136 = arith.mulf %135, %13 : vector<1x16x128xf32>
    %137 = arith.mulf %68, %136 : vector<1x16x128xf32>
    %138 = arith.addf %134, %137 : vector<1x16x128xf32>
    %139 = vector.broadcast %7 : f32 to vector<1x16x128xf32>
    %140 = arith.mulf %139, %34 : vector<1x16x128xf32>
    %141 = arith.subf %138, %140 : vector<1x16x128xf32>
    %c1_i32_46 = arith.constant 1 : i32
    %142 = tpu.dynamic_rotate %141 by %c1_i32_46 dim 1 : vector<1x16x128xf32>, i32 -> vector<1x16x128xf32>
    %c15_i32_47 = arith.constant 15 : i32
    %143 = tpu.dynamic_rotate %141 by %c15_i32_47 dim 1 : vector<1x16x128xf32>, i32 -> vector<1x16x128xf32>
    %c1_i32_48 = arith.constant 1 : i32
    %144 = tpu.dynamic_rotate %141 by %c1_i32_48 dim 2 : vector<1x16x128xf32>, i32 -> vector<1x16x128xf32>
    %c127_i32_49 = arith.constant 127 : i32
    %145 = tpu.dynamic_rotate %141 by %c127_i32_49 dim 2 : vector<1x16x128xf32>, i32 -> vector<1x16x128xf32>
    %146 = arith.addf %142, %143 : vector<1x16x128xf32>
    %147 = arith.addf %146, %144 : vector<1x16x128xf32>
    %148 = arith.addf %147, %145 : vector<1x16x128xf32>
    %cst_50 = arith.constant 4.000000e+00 : f32
    %149 = vector.broadcast %cst_50 : f32 to vector<1x16x128xf32>
    %150 = arith.mulf %149, %141 : vector<1x16x128xf32>
    %151 = arith.subf %148, %150 : vector<1x16x128xf32>
    %152 = vector.broadcast %10 : f32 to vector<1x16x128xf32>
    %153 = arith.mulf %152, %13 : vector<1x16x128xf32>
    %154 = arith.mulf %153, %151 : vector<1x16x128xf32>
    %155 = arith.addf %13, %154 : vector<1x16x128xf32>
    %cst_51 = arith.constant 0.000000e+00 : f32
    %cst_52 = arith.constant 1.000000e+00 : f32
    %156 = vector.broadcast %cst_51 : f32 to vector<1x16x128xf32>
    %157 = arith.maximumf %156, %155 : vector<1x16x128xf32>
    %158 = vector.broadcast %cst_52 : f32 to vector<1x16x128xf32>
    %159 = arith.minimumf %158, %157 : vector<1x16x128xf32>
    %c0_53 = arith.constant 0 : index
    %c0_54 = arith.constant 0 : index
    %c0_55 = arith.constant 0 : index
    %160 = vector.load %arg7[%c0_53, %c0_54, %c0_55] : memref<1x16x128xf32, #tpu.memory_space<vmem>>, vector<1x16x128xf32>
    tpu.vector_store %arg7[%c0_53, %c0_54, %c0_55], %159 {strides = array<i32>} : memref<1x16x128xf32, #tpu.memory_space<vmem>>, vector<1x16x128xf32>,
    return
  }
  func.func @transform_0(%arg0: i32, %arg1: i32) -> i32 {
    %c0_i32 = arith.constant 0 : i32
    %c0_i32_0 = arith.constant 0 : i32
    return %c0_i32 : i32
  }
  func.func @transform_1(%arg0: i32, %arg1: i32) -> (i32, i32, i32) {
    %c0_i32 = arith.constant 0 : i32
    %c0_i32_0 = arith.constant 0 : i32
    %c0_i32_1 = arith.constant 0 : i32
    return %arg0, %c0_i32, %c0_i32_0 : i32, i32, i32
  }
  func.func @transform_2(%arg0: i32, %arg1: i32) -> (i32, i32, i32) {
    %c0_i32 = arith.constant 0 : i32
    %c0_i32_0 = arith.constant 0 : i32
    %c0_i32_1 = arith.constant 0 : i32
    return %arg0, %c0_i32, %c0_i32_0 : i32, i32, i32
  }
  func.func @transform_3(%arg0: i32, %arg1: i32) -> (i32, i32, i32) {
    %c0_i32 = arith.constant 0 : i32
    %c0_i32_0 = arith.constant 0 : i32
    %c0_i32_1 = arith.constant 0 : i32
    return %arg0, %c0_i32, %c0_i32_0 : i32, i32, i32
  }
  func.func @transform_4(%arg0: i32, %arg1: i32) -> (i32, i32, i32) {
    %c0_i32 = arith.constant 0 : i32
    %c0_i32_0 = arith.constant 0 : i32
    %c0_i32_1 = arith.constant 0 : i32
    return %arg0, %c0_i32, %c0_i32_0 : i32, i32, i32
  }
  func.func @transform_5(%arg0: i32, %arg1: i32) -> (i32, i32, i32) {
    %c0_i32 = arith.constant 0 : i32
    %c0_i32_0 = arith.constant 0 : i32
    %c0_i32_1 = arith.constant 0 : i32
    return %arg0, %c0_i32, %c0_i32_0 : i32, i32, i32
  }
  func.func @transform_6(%arg0: i32, %arg1: i32) -> (i32, i32, i32) {
    %c0_i32 = arith.constant 0 : i32
    %c0_i32_0 = arith.constant 0 : i32
    %c0_i32_1 = arith.constant 0 : i32
    return %arg0, %c0_i32, %c0_i32_0 : i32, i32, i32
  }
}

</mosaic_0001>

<bundles_post_ra>
// kernel: irradiation_timesteps.1
= control target key start
LH: loop header
LB: loop body
LE: loop exit
PB: predicated region body
PF: predicated region fallthrough
CT: control target
= control target key end

     0   :  { %s2081_s0 = inlined_call_operand.vmem [shape: f32[9], index: 0, kind: input, shape index: {}]   ;;  %s2082_s1 = inlined_call_operand.hbm [shape: f32[2,16,128], index: 1, kind: input, shape index: {}, may-alias: {1,4}]   ;;  %s2083_s2 = inlined_call_operand.hbm [shape: f32[2,16,128], index: 2, kind: input, shape index: {}, may-alias: {2,5}]   ;;  %s2084_s3 = inlined_call_operand.hbm [shape: f32[2,16,128], index: 3, kind: input, shape index: {}, may-alias: {3,6}]   ;;  %s2085_s4 = inlined_call_operand.hbm [shape: f32[2,16,128], index: 4, kind: output, shape index: {0}, may-alias: {1,4}]   ;;  %s2086_s5 = inlined_call_operand.hbm [shape: f32[2,16,128], index: 5, kind: output, shape index: {1}, may-alias: {2,5}]   ;;  %s2087_s6 = inlined_call_operand.hbm [shape: f32[2,16,128], index: 6, kind: output, shape index: {2}, may-alias: {3,6}]  }
   0x1   :  { %2104 = sst [smem:[#allocation23_spill]] %s2081_s0 }
   0x2   :  { %2105 = sst [smem:[#allocation24_spill]] %s2083_s2 }
   0x3   :  { %12 = vsyncpa [#allocation5], 0 }
   0x4   :  { %13 = vsyncpa [#allocation3], 0 }
   0x5   :  { %15 = vsyncpa [#allocation3 + $0x1], 0 }
   0x6   :  { %16 = vsyncpa [#allocation8], 0 }
   0x7   :  { %18 = vsyncpa [#allocation8 + $0x1], 0 }
   0x8   :  { %19 = vsyncpa [#allocation4], 0 }
   0x9   :  { %21 = vsyncpa [#allocation4 + $0x1], 0 }
   0xa   :  { %22 = vsyncpa [#allocation12], 0 }
   0xb   :  { %24 = vsyncpa [#allocation12 + $0x1], 0  ;;  %s1425_s21 = smov 0   ;;  %s1427_s22 = smov 0  }
   0xc   :  { %s1429_s23 = smov 0   ;;  %s1431_s24 = smov 0  }
   0xd   :  { %s1433_s25 = smov 0   ;;  %s1435_s26 = smov 0  }
   0xe LB: > { %2106 = sst [smem:[#allocation19_spill]] %s1371_s25  ;;  %s42_s27 = sadd.s32 1, %s1371_s25  ;;  %s1375_s26 = sphi %s1435_s26, %s30_s26   ;;  %s1371_s25 = sphi %s1433_s25, %s2135_s25   ;;  %s1367_s24 = sphi %s1431_s24, %s2134_s24   ;;  %s1363_s23 = sphi %s1429_s23, %s2138_s23   ;;  %s1359_s22 = sphi %s1427_s22, %s2137_s22   ;;  %s1355_s21 = sphi %s1425_s21, %s2136_s21  }
   0xf   : > { %2107 = sst [smem:[#allocation20_spill]] %s1375_s26  ;;  %s70_s28 = sadd.s32 1, %s1363_s23 }
  0x10   : > { %p44_p0 = scmp.ge.s32.totalorder %s42_s27, 2  ;;  %p2088_p1 = scmp.ne.s32.totalorder %s1363_s23, %s1359_s22 }
  0x11   : > { %p78_p2 = scmp.eq.s32.totalorder %s1375_s26, 0  ;;  %p1050_p5 = scmp.lt.s32.totalorder %s1375_s26, 2 }
  0x12   : > { %s2140_s27 = smov (%p44_p0, %s42_s27), 0  ;;  %s2094_s30 = sand.u32 1, %s1363_s23  }
  0x13   : > { %2108 = sst [smem:[#allocation21_spill]] %s2140_s27  ;;  %p79_p4 = por %p78_p2, %p2088_p1 }
  0x14   : > { %s67_s29 = ssub.s32 %s1371_s25, %s2140_s27  ;;  %s1472_s7 = sshll.u32 %s2094_s30, 4 }
  0x15   : > { %p68_p6 = scmp.eq.s32.totalorder %s67_s29, 0  ;;  %s1475_s8 = sshll.u32 %s1371_s25, 8 }
  0x16   : > { %p1477_p7 = pnand %p1050_p5, %p79_p4  ;;  %s269_s11 = sand.u32 1, %s1375_s26  }
  0x17   : > { %s1482_s10 = scalar_select %p68_p6, %s1363_s23, %s70_s28  }
  0x18   : > { %s2111_s2 = sld [smem:[#allocation24_spill]]  ;;  %s273_s15 = scalar_lea.vmem [#allocation7], %s1472_s7 }
  0x19   : > { %2110 = sst [smem:[#allocation22_spill]] %s1482_s10  ;;  %s280_s16 = sshll.u32 %s273_s15, 4  ;;  %s1492_s16 = int_to_ptr.vmem [resolvable:$true] %s280_s16 }
  0x1a   : > { %s1494_s17 = scalar_lea.sflag [#allocation8], %s269_s11  ;;  %p1500_p9 = pneg %p1477_p7 }
  0x1e   : > { %s1489_s14 = scalar_lea.hbm %s2111_s2, %s1475_s8  ;;  %s1125_s29 = scalar_lea.hbm %s2111_s2, 512 }
  0x1f   : > { %s1120_s18 = scalar_lea.hbm %s1489_s14, 256  ;;  %p1126_p12 = scmp.lt.u32.totalorder %s1489_s14, %s2111_s2 }
  0x20   : > { %p1121_p8 = scmp.ne.s32.totalorder %s1489_s14, %s1120_s18  ;;  %p1127_p13 = scmp.lt.u32.totalorder %s1125_s29, %s1120_s18 }
  0x21   : > { %p1129_p2 = scmp.lt.u32.totalorder %s1120_s18, %s1489_s14 }
  0x22   : > { %p1123_p10 = pnand %p1500_p9, %p1121_p8  ;;  %p1128_p0 = por %p1127_p13, %p1126_p12 }
  0x24   : > { %p1124_p11 = pneg %p1123_p10  ;;  %p1130_p4 = por %p1129_p2, %p1128_p0 }
  0x26   : > { %p1131_p5 = pnand %p1130_p4, %p1124_p11 }
  0x28   : > { %1134 = shalt.err (!%p1131_p5)
}
  0x29   : > { %s1135_s11 = scalar_lea.vmem %s1492_s16, 256  ;;  %s1377_s15 = smov [#allocation7]  }
  0x2a   : > { %p1136_p6 = scmp.ne.s32.totalorder %s1492_s16, %s1135_s11  ;;  %s1140_s20 = sshll.u32 %s1377_s15, 4  ;;  %s1141_s20 = int_to_ptr.vmem [resolvable:$false] %s1140_s20 }
  0x2b   : > { %s1142_s28 = scalar_lea.vmem %s1141_s20, 512  ;;  %p1143_p3 = scmp.lt.s32.totalorder %s1492_s16, %s1141_s20 }
  0x2c   : > { %p1138_p8 = pnand %p1136_p6, %p1500_p9  ;;  %p1144_p1 = scmp.lt.s32.totalorder %s1142_s28, %s1135_s11 }
  0x2e   : > { %p1139_p10 = pneg %p1138_p8  ;;  %p1145_p12 = por %p1144_p1, %p1143_p3 }
  0x30   : > { %p1146_p13 = pnand %p1145_p12, %p1139_p10 }
  0x32   : > { %1149 = shalt.err (!%p1146_p13)
}
  0x33   : > { %s2090_s18 = smov 128   ;;  %s2092_s29 = smov 8  }
  0x34   : > { %1035 = dma.hbm_to_vmem [thread:$0]  (!%p1477_p7), %s1489_s14, 256, %s1492_s16, %s1494_s17, %s2090_s18, %s2090_s18, %s2092_s29  }
  0x35   : > { %s1528_s12 = sadd.s32 4294967295, %s1375_s26   ;;  %s2089_s13 = sadd.s32 4294967294, %s1375_s26  }
  0x36   : > { %p83_p1 = scmp.ne.s32.totalorder %s1359_s22, %s1355_s21  ;;  %p2099_p3 = scmp.eq.s32.totalorder %s1528_s12, 0 }
  0x37   : > { %p159_p11 = scmp.eq.s32.totalorder %s1528_s12, 1  ;;  %p165_p0 = scmp.eq.s32.totalorder %s2089_s13, 1 }
  0x38   : > { %p960_p2 = scmp.ge.s32.totalorder %s1375_s26, 1  ;;  %p1540_p4 = por %p2099_p3, %p83_p1 }
  0x39   : > { %p2114_p5 = scmp.ne.s32.totalorder %s1363_s23, %s1359_s22  ;;  %p1551_p8 = por %p165_p0, %p83_p1 }
  0x3a   : > { %s2113_s11 = scalar_select %p1540_p4, 1, 0 }
  0x3b   : > { %p1547_p6 = por %p159_p11, %p2114_p5  ;;  %p224_p10 = scmp.lt.s32.totalorder %s1375_s26, 3 }
  0x3c   : > { %s2116_s16 = scalar_select %p1551_p8, 1, 0 }
  0x3d   : > { %s2115_s14 = scalar_select %p1547_p6, 1, 0 }
  0x3e   : > { %s2117_s0 = sld [smem:[#allocation23_spill]]  ;;  %p1559_p12 = pnand %p960_p2, %p224_p10 }
  0x3f   : > { %s1571_s30 = scalar_lea.hbm %s2082_s1, %s1475_s8  ;;  %s252_s15 = scalar_lea.vmem [#allocation6], %s1472_s7 }
  0x40   : > { %s2118_s13 = scalar_select %p1559_p12, 1, 0 }
  0x41   : > { %p1025_p13 = pneg %p1559_p12  ;;  %s259_s20 = sshll.u32 %s252_s15, 4  ;;  %s1580_s20 = int_to_ptr.vmem [resolvable:$true] %s259_s20 }
  0x42   : > { %s2120_s2 = sand.u32 1, %s1363_s23   ;;  %s1150_s25 = scalar_lea.hbm %s1571_s30, 256 }
  0x43   : > { %p1576_p1 = pnand %p1025_p13, %p2099_p3  ;;  %s1584_s27 = scalar_lea.sflag [#allocation3], %s2120_s2 }
  0x44   : > { %s237_s28 = sshll.u32 %s2117_s0, 4  ;;  %p1151_p11 = scmp.ne.s32.totalorder %s1571_s30, %s1150_s25  ;;  %s1563_s28 = int_to_ptr.vmem [resolvable:$true] %s237_s28 }
  0x45   : > { %s2119_s0 = scalar_select %p1576_p1, 1, 0 }
  0x46   : > { %p1153_p0 = pnand %p1151_p11, %p1500_p9  ;;  %s1155_s10 = scalar_lea.hbm %s2082_s1, 512 }
  0x47   : > { %p1156_p5 = scmp.lt.u32.totalorder %s1571_s30, %s2082_s1  ;;  %p1157_p10 = scmp.lt.u32.totalorder %s1155_s10, %s1150_s25 }
  0x48   : > { %p1154_p2 = pneg %p1153_p0  ;;  %p1159_p3 = scmp.lt.u32.totalorder %s1150_s25, %s1571_s30 }
  0x49   : > { %p1158_p13 = por %p1157_p10, %p1156_p5 }
  0x4b   : > { %p1160_p8 = por %p1159_p3, %p1158_p13 }
  0x4d   : > { %p1161_p6 = pnand %p1160_p8, %p1154_p2 }
  0x4f   : > { %1164 = shalt.err (!%p1161_p6)
}
  0x50   : > { %s1165_s2 = scalar_lea.vmem %s1580_s20, 256  ;;  %s1380_s18 = smov [#allocation6]  }
  0x51   : > { %p1166_p11 = scmp.ne.s32.totalorder %s1580_s20, %s1165_s2  ;;  %s1170_s29 = sshll.u32 %s1380_s18, 4  ;;  %s1171_s29 = int_to_ptr.vmem [resolvable:$false] %s1170_s29 }
  0x52   : > { %s1172_s26 = scalar_lea.vmem %s1171_s29, 512  ;;  %p1173_p12 = scmp.lt.s32.totalorder %s1580_s20, %s1171_s29 }
  0x53   : > { %p1168_p0 = pnand %p1166_p11, %p1500_p9  ;;  %p1174_p1 = scmp.lt.s32.totalorder %s1172_s26, %s1165_s2 }
  0x55   : > { %p1169_p4 = pneg %p1168_p0  ;;  %p1175_p5 = por %p1174_p1, %p1173_p12 }
  0x57   : > { %p1176_p10 = pnand %p1175_p5, %p1169_p4 }
  0x59   : > { %1179 = shalt.err (!%p1176_p10)
}
  0x5a   : > { %s2121_s25 = smov 8   ;;  %s2122_s10 = smov 128  }
  0x5b   : > { %1032 = dma.hbm_to_vmem [thread:$0]  (!%p1477_p7), %s1571_s30, 256, %s1580_s20, %s1584_s27, %s2122_s10, %s2122_s10, %s2121_s25  }
  0x5c   : > { %s1180_s15 = scalar_lea.vmem %s1563_s28, 16  ;;  %p2123_p6 = scmp.ne.s32.totalorder %s2119_s0, 0 }
  0x5d   : > { %p1181_p3 = scmp.ne.s32.totalorder %s1563_s28, %s1180_s15  ;;  %p1188_p1 = scmp.lt.s32.totalorder %s1563_s28, %s1563_s28 }
  0x5e   : > { %p1182_p8 = pneg %p2123_p6  ;;  %p1189_p2 = scmp.lt.s32.totalorder %s1180_s15, %s1180_s15 }
  0x60   : > { %p1183_p12 = pnand %p1182_p8, %p1181_p3  ;;  %p1190_p13 = por %p1189_p2, %p1188_p1 }
  0x62   : > { %p1184_p4 = pneg %p1183_p12 }
  0x64   : > { %p1191_p11 = pnand %p1190_p13, %p1184_p4 }
  0x66   : > { %1194 = shalt.err (!%p1191_p11)
}
  0x67   : > { %s1381_s2 = smov [#allocation2]   ;;  %s1624_s20 = scalar_lea.hbm %s2084_s3, %s1475_s8 }
  0x68   : > { %1028 = dma.vmem_to_smem (!%p2123_p6), %s1563_s28, 16, %s1381_s2, [#allocation5]  }
  0x69   : > { %s294_s18 = scalar_lea.vmem [#allocation9], %s1472_s7  ;;  %s1195_s26 = scalar_lea.hbm %s1624_s20, 256 }
  0x6a   : > { %s301_s29 = sshll.u32 %s294_s18, 4  ;;  %p1196_p0 = scmp.ne.s32.totalorder %s1624_s20, %s1195_s26  ;;  %s1627_s29 = int_to_ptr.vmem [resolvable:$true] %s301_s29 }
  0x6b   : > { %s1200_s15 = scalar_lea.hbm %s2084_s3, 512  ;;  %p1201_p3 = scmp.lt.u32.totalorder %s1624_s20, %s2084_s3 }
  0x6c   : > { %p1198_p5 = pnand %p1196_p0, %p1500_p9  ;;  %p1202_p6 = scmp.lt.u32.totalorder %s1200_s15, %s1195_s26 }
  0x6d   : > { %p1204_p12 = scmp.lt.u32.totalorder %s1195_s26, %s1624_s20 }
  0x6e   : > { %p1199_p10 = pneg %p1198_p5  ;;  %p1203_p8 = por %p1202_p6, %p1201_p3 }
  0x70   : > { %p1205_p4 = por %p1204_p12, %p1203_p8 }
  0x72   : > { %p1206_p1 = pnand %p1205_p4, %p1199_p10 }
  0x74   : > { %1209 = shalt.err (!%p1206_p1)
}
  0x75   : > { %s1210_s7 = scalar_lea.vmem %s1627_s29, 256  ;;  %s1382_s27 = smov [#allocation9]  }
  0x76   : > { %p1211_p2 = scmp.ne.s32.totalorder %s1627_s29, %s1210_s7  ;;  %s1215_s30 = sshll.u32 %s1382_s27, 4  ;;  %s1216_s30 = int_to_ptr.vmem [resolvable:$false] %s1215_s30 }
  0x77   : > { %s1217_s18 = scalar_lea.vmem %s1216_s30, 512  ;;  %p1218_p0 = scmp.lt.s32.totalorder %s1627_s29, %s1216_s30 }
  0x78   : > { %p1213_p13 = pnand %p1211_p2, %p1500_p9  ;;  %p1219_p5 = scmp.lt.s32.totalorder %s1217_s18, %s1210_s7 }
  0x7a   : > { %p1214_p11 = pneg %p1213_p13  ;;  %p1220_p3 = por %p1219_p5, %p1218_p0 }
  0x7c   : > { %p1221_p6 = pnand %p1220_p3, %p1214_p11 }
  0x7e   : > { %1224 = shalt.err (!%p1221_p6)
}
  0x7f   : > { %1038 = dma.hbm_to_vmem [thread:$0]  (!%p1477_p7), %s1624_s20, 256, %s1627_s29, %s1494_s17, %s2122_s10, %s2122_s10, %s2121_s25  }
  0x80   : > { %p2124_p9 = scmp.ne.s32.totalorder %s2118_s13, 0 }
  0x81   : > { %p2125_p10 = scmp.eq.s32.totalorder (!%p2124_p9), %s1528_s12, 0 }
  0x82   : > { %313 = sbr.rel (%p2124_p9) target bundleno = 481 (0x1e1), region = 36 }
  0x89   : > { %1334 = dma.done.wait (%p2125_p10), [#allocation5], 16   ;;  %p2126_p8 = pmov %p2125_p10 }
  0x8a   : > { %s1661_s19 = sand.u32 1, %s1359_s22   ;;  %p2127_p7 = scmp.ne.s32.totalorder %s2113_s11, 0 }
  0x8b   : > { %1336 = vsyncadd (%p2126_p8), [#allocation5], 4294967280  ;;  %s1664_s9 = sshll.u32 %s1661_s19, 4  ;;  %s320_s26 = scalar_lea.sflag [#allocation3], %s1661_s19 }
  0x8c   : > { %s323_s17 = scalar_lea.vmem [#allocation6], %s1664_s9 }
  0x8d   : > { %1338 = dma.done.wait (%p2127_p7), %s320_s26, 256  }
  0x8e   : > { %1340 = vsyncadd (%p2127_p7), %s320_s26, 4294967040  ;;  %s328_s13 = sand.u32 1, %s1528_s12   ;;  %s332_s10 = scalar_lea.vmem [#allocation7], %s1664_s9 }
  0x8f   : > { %s329_s25 = scalar_lea.sflag [#allocation8], %s328_s13 }
  0x90   : > { %1342 = dma.done.wait (%p2127_p7), %s329_s25, 512  }
  0x91   : > { %1344 = vsyncadd (%p2127_p7), %s329_s25, 4294966784  ;;  %s341_s20 = scalar_lea.vmem [#allocation9], %s1664_s9 }
  0x92   : > { %346 = sfence }
  0x93   : > { %v1681_v0 = vld [vmem:[%s332_s10] sm:$0xff]  ;;  %s1383_s29 = smov 1   ;;  %v1689_v2 = vld [vmem:[%s332_s10 + $0x8] sm:$0xff]  ;;  %s1384_s11 = smov 127   ;;  %v424_v12 = vlaneseq }
  0x94   : > { %v1683_v1 = vld [vmem:[%s323_s17] sm:$0xff]  ;;  %460 = vrot.lane.b32.xlu0 %v1681_v0, %s1383_s29  ;;  %v1691_v3 = vld [vmem:[%s323_s17 + $0x8] sm:$0xff]  ;;  %v521_v9 = vmax.f32 %v1681_v0, 1e-06  ;;  %v522_v11 = vmax.f32 %v1689_v2, 1e-06 }
  0x95   : > { %434 = vrot.lane.b32.xlu1 %v1683_v1, %s1383_s29  ;;  %v1705_v4 = vld [vmem:[%s341_s20] sm:$0xff]  ;;  %v1707_v5 = vld [vmem:[%s341_s20 + $0x8] sm:$0xff]  ;;  %v508_v6 = vsub.f32 1.0, %v1683_v1  ;;  %v509_v7 = vsub.f32 1.0, %v1691_v3  ;;  %v512_v13 = vmax.f32 %v1683_v1, 1e-06 }
  0x96   : > { %v513_v14 = vmax.f32 %v1691_v3, 1e-06  ;;  %1108 = vlog2.f32 %v521_v9  ;;  %v1731_v17 = vshrl.u32 %v424_v12, 7  ;;  %v453_v18 = vrot.slane %v1689_v2, 7  ;;  %s980_s0 = sld [smem:[#allocation2 + $0x1]]  ;;  %s981_s28 = sld [smem:[#allocation2 + $0x2]] }
  0x97   : > { %v1720_v8 = vsub.f32 %v508_v6, %v1681_v0  ;;  %v1724_v10 = vsub.f32 %v509_v7, %v1689_v2  ;;  %1110 = vlog2.f32 %v522_v11  ;;  %v457_v19 = vrot.slane %v1689_v2, 1  ;;  %s1743_s15 = sld [smem:[#allocation2]]  ;;  %s1761_s2 = sld [smem:[#allocation2 + $0x4]] }
  0x98   : > { %462 = vrot.lane.b32.xlu0 %v1689_v2, %s1383_s29  ;;  %1112 = vlog2.f32 %v512_v13  ;;  %v452_v20 = vrot.slane %v1681_v0, 7  ;;  %v456_v21 = vrot.slane %v1681_v0, 1  ;;  %v423_v22 = vrot.slane %v1691_v3, 7  ;;  %s1775_s8 = sld [smem:[#allocation2 + $0x3]]  ;;  %s1849_s7 = sld [smem:[#allocation2 + $0x5]] }
  0x99   : > { %436 = vrot.lane.b32.xlu1 %v1691_v3, %s1383_s29  ;;  %v529_v15 = vmax.f32 %v1720_v8, 1e-06  ;;  %v530_v16 = vmax.f32 %v1724_v10, 1e-06  ;;  %1114 = vlog2.f32 %v513_v14  ;;  %v430_v23 = vrot.slane %v1691_v3, 1  ;;  %s1881_s27 = sld [smem:[#allocation2 + $0x8]] }
  0x9a   : > { %v422_v24 = vrot.slane %v1683_v1, 7  ;;  %v429_v25 = vrot.slane %v1683_v1, 1  ;;  %vm426_vm0 = vcmp.lt.s32.totalorder %v1731_v17, 1  ;;  %vm431_vm1 = vcmp.lt.s32.totalorder %v1731_v17, 7  ;;  %s1929_s30 = scalar_lea.vmem [#allocation13], %s1664_s9  ;;  %s986_s18 = sld [smem:[#allocation2 + $0x7]] }
  0x9b   : > { %1116 = vlog2.f32 %v529_v15  ;;  %v455_v26 = vsel %vm426_vm0, %v453_v18, %v452_v20  ;;  %v458_v27 = vsel %vm431_vm1, %v456_v21, %v457_v19  ;;  %v454_v31 = vsel %vm426_vm0, %v452_v20, %v453_v18  ;;  %s985_s26 = sld [smem:[#allocation2 + $0x6]]  ;;  %s1006_s17 = sshll.u32 %s1367_s24, 8 }
  0x9c   : > { %464 = vrot.lane.b32.xlu0 %v1681_v0, %s1384_s11  ;;  %1118 = vlog2.f32 %v530_v16  ;;  %v428_v29 = vsel %vm426_vm0, %v423_v22, %v422_v24  ;;  %v432_v30 = vsel %vm431_vm1, %v429_v25, %v430_v23  ;;  %v459_v32 = vsel %vm431_vm1, %v457_v19, %v456_v21  ;;  %s383_s25 = scalar_lea.vmem [#allocation11], %s1664_s9  ;;  %s761_s20 = sshll.u32 %s1929_s30, 4  ;;  %s1964_s20 = int_to_ptr.vmem [resolvable:$true] %s761_s20 }
  0x9d   : > { %466 = vrot.lane.b32.xlu1 %v1689_v2, %s1384_s11  ;;  %v427_v34 = vsel %vm426_vm0, %v422_v24, %v423_v22  ;;  %v433_v35 = vsel %vm431_vm1, %v430_v23, %v429_v25  ;;  %v1764_v37 = vadd.f32 -1.0, %v1705_v4  ;;  %v539_v38 = vmul.f32 %v1705_v4, %v1705_v4  ;;  %s745_s10 = sshll.u32 %s383_s25, 4  ;;  %p2128_p4 = scmp.ne.s32.totalorder %s2115_s14, 0  ;;  %s1957_s10 = int_to_ptr.vmem [resolvable:$true] %s745_s10 }
  0x9e   : > { %v1769_v39 = vmul.f32 4.0, %v1681_v0  ;;  %v1773_v40 = vmul.f32 %v1707_v5, %v1707_v5  ;;  %v1777_v42 = vadd.f32 %v458_v27, %v455_v26  ;;  %v1779_v43 = vadd.f32 %v432_v30, %v428_v29 }
  0x9f   : > { %v1781_v44 = vadd.f32 %v459_v32, %v454_v31  ;;  %v1783_v47 = vadd.f32 %v433_v35, %v427_v34  ;;  %v518_v48 = vstv %s981_s28  ;;  %v544_v49 = vstv %s980_s0  ;;  %s1949_s0 = scalar_lea.hbm %s2086_s5, %s1006_s17  ;;  %s1952_s28 = scalar_lea.vmem [#allocation10], %s1664_s9 }
  0xa0   : > { %438 = vrot.lane.b32.xlu0 %v1683_v1, %s1384_s11  ;;  %v1109_v28 = vpop.eup %1108  ;;  %v655_v52 = vmul.f32 2.0, %v1681_v0  ;;  %v1787_v53 = vadd.f32 -1.0, %v1707_v5  ;;  %v541_v54 = vstv %s1743_s15  ;;  %v990_v55 = vadd.f32 -1.0, %v1683_v1  ;;  %s729_s15 = sshll.u32 %s1952_s28, 4  ;;  %s1971_s15 = int_to_ptr.vmem [resolvable:$true] %s729_s15 }
  0xa1   : > { %440 = vrot.lane.b32.xlu1 %v1691_v3, %s1384_s11  ;;  %v1111_v33 = vpop.eup %1110  ;;  %v524_v45 = vmul.f32 0.6931472, %v1109_v28  ;;  %v545_v58 = vmul.f32 %v544_v49, %v1681_v0  ;;  %v542_v59 = vmul.f32 %v541_v54, %v1683_v1  ;;  %v543_v62 = vmul.f32 %v541_v54, %v1691_v3 }
  0xa2   : > { %v1113_v36 = vpop.eup %1112  ;;  %v526_v50 = vmul.f32 0.6931472, %v1111_v33  ;;  %v546_v63 = vmul.f32 %v544_v49, %v1689_v2  ;;  %v1797_v6 = vmul.f32 %v1764_v37, %v1764_v37  ;;  %v1800_v7 = vmul.f32 4.0, %v1689_v2 }
  0xa3   : > { %v1115_v41 = vpop.eup %1114  ;;  %v515_v56 = vmul.f32 0.6931472, %v1113_v36  ;;  %v527_v60 = vmul.f32 %v524_v45, %v518_v48  ;;  %v661_v12 = vstv %s1761_s2  ;;  %v1803_v13 = vmul.f32 %v655_v52, %v539_v38 }
  0xa4   : > { %486 = vrot.lane.b32.xlu0 %v1705_v4, %s1383_s29  ;;  %v517_v57 = vmul.f32 0.6931472, %v1115_v41  ;;  %v528_v9 = vmul.f32 %v526_v50, %v518_v48  ;;  %v1807_v14 = vmul.f32 %v1787_v53, %v1787_v53  ;;  %v656_v15 = vmul.f32 2.0, %v1689_v2 }
  0xa5   : > { %488 = vrot.lane.b32.xlu1 %v1707_v5, %s1383_s29  ;;  %v1117_v46 = vpop.eup %1116  ;;  %v605_v16 = vstv %s1775_s8  ;;  %v519_v18 = vmul.f32 %v518_v48, %v515_v56  ;;  %v599_v19 = vmul.f32 2.0, %v990_v55  ;;  %v649_v22 = vadd.f32 %v544_v49, %v527_v60  ;;  %s1962_s8 = scalar_lea.hbm %s2087_s6, %s1006_s17 }
  0xa6   : > { %v1119_v51 = vpop.eup %1118  ;;  %v532_v61 = vmul.f32 0.6931472, %v1117_v46  ;;  %v520_v20 = vmul.f32 %v518_v48, %v517_v57  ;;  %v547_v23 = vadd.f32 %v545_v58, %v542_v59  ;;  %v548_v24 = vadd.f32 %v546_v63, %v543_v62 }
  0xa7   : > { %v534_v11 = vmul.f32 0.6931472, %v1119_v51  ;;  %v650_v26 = vadd.f32 %v544_v49, %v528_v9  ;;  %v549_v27 = vmul.f32 %v519_v18, %v1683_v1  ;;  %v1814_v29 = vmul.f32 4.0, %v1683_v1 }
  0xa8   : > { %490 = vrot.lane.b32.xlu0 %v1705_v4, %s1384_s11  ;;  %v535_v21 = vmul.f32 %v532_v61, %v518_v48  ;;  %v550_v28 = vmul.f32 %v520_v20, %v1691_v3  ;;  %v991_v30 = vadd.f32 -1.0, %v1691_v3  ;;  %v478_v31 = vrot.slane %v1705_v4, 7 }
  0xa9   : > { %492 = vrot.lane.b32.xlu1 %v1707_v5, %s1384_s11  ;;  %v536_v25 = vmul.f32 %v534_v11, %v518_v48  ;;  %v479_v32 = vrot.slane %v1707_v5, 7  ;;  %v658_v35 = vmul.f32 %v656_v15, %v1773_v40  ;;  %v601_v36 = vmul.f32 %v599_v19, %v539_v38 }
  0xaa   : > { %v1821_v41 = vmul.f32 4.0, %v1691_v3  ;;  %v482_v45 = vrot.slane %v1705_v4, 1  ;;  %v651_v46 = vsub.f32 %v649_v22, %v535_v21  ;;  %v593_v48 = vadd.f32 %v541_v54, %v519_v18 }
  0xab   : > { %v553_v49 = vmul.f32 %v527_v60, %v1681_v0  ;;  %v554_v50 = vmul.f32 %v528_v9, %v1689_v2  ;;  %v652_v51 = vsub.f32 %v650_v26, %v536_v25  ;;  %v594_v52 = vadd.f32 %v541_v54, %v520_v20 }
  0xac   : > { %v551_v56 = vadd.f32 %v549_v27, %v547_v23  ;;  %v552_v57 = vadd.f32 %v550_v28, %v548_v24  ;;  %v600_v58 = vmul.f32 2.0, %v991_v30  ;;  %v481_v59 = vsel %vm426_vm0, %v479_v32, %v478_v31 }
  0xad   : > { %v483_v38 = vrot.slane %v1707_v5, 1  ;;  %v480_v61 = vsel %vm426_vm0, %v478_v31, %v479_v32  ;;  %v563_v60 = vmul.f32 %v1681_v0, %v1681_v0  ;;  %v561_v11 = vmul.f32 %v990_v55, %v990_v55 }
  0xae   : > { %v562_v9 = vmul.f32 %v991_v30, %v991_v30  ;;  %v564_v54 = vmul.f32 %v1689_v2, %v1689_v2  ;;  %v653_v15 = vmul.f32 %v651_v46, %v1797_v6  ;;  %v595_v18 = vsub.f32 %v593_v48, %v535_v21 }
  0xaf   : > { %v557_v19 = vmul.f32 %v535_v21, %v1720_v8  ;;  %v558_v20 = vmul.f32 %v536_v25, %v1724_v10  ;;  %v654_v22 = vmul.f32 %v652_v51, %v1807_v14  ;;  %v596_v23 = vsub.f32 %v594_v52, %v536_v25 }
  0xb0   : > { %v555_v24 = vadd.f32 %v553_v49, %v551_v56  ;;  %v556_v26 = vadd.f32 %v554_v50, %v552_v57  ;;  %v602_v28 = vmul.f32 %v600_v58, %v1773_v40  ;;  %v1843_v30 = vmul.f32 4.0, %v1705_v4 }
  0xb1   : > { %v484_v8 = vsel %vm431_vm1, %v482_v45, %v483_v38  ;;  %v485_v10 = vsel %vm431_vm1, %v483_v38, %v482_v45  ;;  %v565_v21 = vadd.f32 %v563_v60, %v561_v11  ;;  %v566_v25 = vadd.f32 %v564_v54, %v562_v9 }
  0xb2   : > { %v597_v40 = vmul.f32 %v595_v18, %v1797_v6  ;;  %v660_v46 = vadd.f32 %v658_v35, %v654_v22  ;;  %v598_v48 = vmul.f32 %v596_v23, %v1807_v14  ;;  %v559_v49 = vadd.f32 %v557_v19, %v555_v24 }
  0xb3   : > { %v560_v50 = vadd.f32 %v558_v20, %v556_v26  ;;  %v494_v58 = vadd.f32 %v484_v8, %v481_v59  ;;  %v495_v38 = vadd.f32 %v485_v10, %v480_v61  ;;  %v572_v6 = vmul.f32 2.0, %v566_v25 }
  0xb4   : > { %v501_v18 = vmul.f32 4.0, %v1707_v5 }
 0x106   : > { %v461_v33 = vpop.permute.xlu0 %460 }
 0x107   : > { %v435_v34 = vpop.permute.xlu1 %434  ;;  %v470_v27 = vadd.f32 %v1777_v42, %v461_v33 }
 0x108   : > { %v444_v51 = vadd.f32 %v1779_v43, %v435_v34  ;;  %v604_v34 = vadd.f32 %v602_v28, %v598_v48 }
 0x10a   : > { %v463_v62 = vpop.permute.xlu0 %462 }
 0x10b   : > { %v437_v63 = vpop.permute.xlu1 %436  ;;  %v471_v55 = vadd.f32 %v1781_v44, %v463_v62  ;;  %v659_v44 = vadd.f32 %v1803_v13, %v653_v15  ;;  %v571_v62 = vmul.f32 2.0, %v565_v21  ;;  %v577_v15 = vstv %s1849_s7 }
 0x10c   : > { %v445_v45 = vadd.f32 %v1783_v47, %v437_v63  ;;  %v603_v47 = vadd.f32 %v601_v36, %v597_v40  ;;  %v568_v63 = vmul.f32 2.0, %v560_v50  ;;  %v574_v36 = vmul.f32 %v572_v6, %v1707_v5 }
 0x10e   : > { %v465_v31 = vpop.permute.xlu0 %464  ;;  %v570_v28 = vmul.f32 %v1787_v53, %v568_v63 }
 0x10f   : > { %v467_v32 = vpop.permute.xlu1 %466  ;;  %v472_v42 = vadd.f32 %v470_v27, %v465_v31 }
 0x110   : > { %v473_v33 = vadd.f32 %v471_v55, %v467_v32 }
 0x111   : > { %v476_v52 = vsub.f32 %v472_v42, %v1769_v39  ;;  %v567_v39 = vmul.f32 2.0, %v559_v49 }
 0x112   : > { %v477_v56 = vsub.f32 %v473_v33, %v1800_v7  ;;  %v439_v57 = vpop.permute.xlu0 %438 }
 0x113   : > { %v441_v13 = vpop.permute.xlu1 %440  ;;  %v662_v35 = vmul.f32 %v661_v12, %v476_v52  ;;  %v446_v60 = vadd.f32 %v444_v51, %v439_v57  ;;  %v569_v55 = vmul.f32 %v1764_v37, %v567_v39  ;;  %v576_v51 = vadd.f32 %v574_v36, %v570_v28 }
 0x114   : > { %v663_v14 = vmul.f32 %v661_v12, %v477_v56  ;;  %v447_v43 = vadd.f32 %v445_v45, %v441_v13  ;;  %v573_v12 = vmul.f32 %v571_v62, %v1705_v4  ;;  %v582_v62 = vstv %s1881_s27  ;;  %s1969_s27 = scalar_lea.hbm %s2085_s4, %s1006_s17 }
 0x115   : > { %v1862_v7 = vsub.f32 %v659_v44, %v662_v35  ;;  %v450_v59 = vsub.f32 %v446_v60, %v1814_v29 }
 0x116   : > { %v1864_v11 = vsub.f32 %v660_v46, %v663_v14  ;;  %v451_v61 = vsub.f32 %v447_v43, %v1821_v41  ;;  %v487_v9 = vpop.permute.xlu0 %486  ;;  %v575_v50 = vadd.f32 %v573_v12, %v569_v55  ;;  %v692_v12 = vstv %s986_s18  ;;  %s1225_s18 = scalar_lea.vmem %s1957_s10, 256 }
 0x117   : > { %v489_v54 = vpop.permute.xlu1 %488  ;;  %v606_v19 = vmul.f32 %v605_v16, %v450_v59  ;;  %674 = vrot.lane.b32.xlu0 %v1862_v7, %s1383_s29  ;;  %v496_v29 = vadd.f32 %v494_v58, %v487_v9  ;;  %v666_v24 = vrot.slane %v1862_v7, 7  ;;  %v670_v26 = vrot.slane %v1862_v7, 1  ;;  %p1226_p12 = scmp.ne.s32.totalorder %s1957_s10, %s1225_s18 }
 0x118   : > { %v607_v20 = vmul.f32 %v605_v16, %v451_v61  ;;  %676 = vrot.lane.b32.xlu1 %v1864_v11, %s1383_s29  ;;  %v667_v41 = vrot.slane %v1864_v11, 7  ;;  %v497_v22 = vadd.f32 %v495_v38, %v489_v54  ;;  %v671_v23 = vrot.slane %v1864_v11, 1 }
 0x119   : > { %v1886_v27 = vsub.f32 %v603_v47, %v606_v19  ;;  %v693_v36 = vmul.f32 %v692_v12, %v1681_v0  ;;  %p1227_p1 = pnand %p1226_p12, %p2128_p4 }
 0x11a   : > { %v1888_v16 = vsub.f32 %v604_v34, %v607_v20  ;;  %v491_v31 = vpop.permute.xlu0 %490  ;;  %v668_v8 = vsel %vm426_vm0, %v666_v24, %v667_v41  ;;  %v673_v10 = vsel %vm431_vm1, %v671_v23, %v670_v26  ;;  %v669_v21 = vsel %vm426_vm0, %v667_v41, %v666_v24 }
 0x11b   : > { %v493_v32 = vpop.permute.xlu1 %492  ;;  %v672_v25 = vsel %vm431_vm1, %v670_v26, %v671_v23  ;;  %618 = vrot.lane.b32.xlu0 %v1886_v27, %s1383_s29  ;;  %v498_v37 = vadd.f32 %v496_v29, %v491_v31  ;;  %v683_v42 = vadd.f32 %v673_v10, %v668_v8  ;;  %v610_v44 = vrot.slane %v1886_v27, 7  ;;  %p1228_p2 = pneg %p1227_p1 }
 0x11c   : > { %620 = vrot.lane.b32.xlu1 %v1888_v16, %s1383_s29  ;;  %v499_v53 = vadd.f32 %v497_v22, %v493_v32  ;;  %v682_v33 = vadd.f32 %v672_v25, %v669_v21  ;;  %v611_v40 = vrot.slane %v1888_v16, 7  ;;  %v614_v46 = vrot.slane %v1886_v27, 1 }
 0x11d   : > { %v615_v48 = vrot.slane %v1888_v16, 1  ;;  %v502_v49 = vsub.f32 %v498_v37, %v1843_v30  ;;  %v694_v20 = vmul.f32 %v692_v12, %v1689_v2  ;;  %v689_v22 = vmul.f32 4.0, %v1864_v11 }
 0x11e   : > { %v503_v45 = vsub.f32 %v499_v53, %v501_v18  ;;  %v613_v52 = vsel %vm426_vm0, %v611_v40, %v610_v44  ;;  %v612_v57 = vsel %vm426_vm0, %v610_v44, %v611_v40  ;;  %v636_v24 = vstv %s985_s26  ;;  %s1385_s26 = smov [#allocation11]  }
 0x11f   : > { %v616_v56 = vsel %vm431_vm1, %v614_v46, %v615_v48  ;;  %v617_v13 = vsel %vm431_vm1, %v615_v48, %v614_v46  ;;  %678 = vrot.lane.b32.xlu0 %v1862_v7, %s1384_s11  ;;  %v578_v30 = vmul.f32 %v577_v15, %v502_v49  ;;  %v637_v32 = vmul.f32 %v636_v24, %v1683_v1  ;;  %s1229_s29 = sshll.u32 %s1385_s26, 4  ;;  %s1230_s29 = int_to_ptr.vmem [resolvable:$false] %s1229_s29 }
 0x120   : > { %680 = vrot.lane.b32.xlu1 %v1864_v11, %s1384_s11  ;;  %v579_v58 = vmul.f32 %v577_v15, %v503_v45  ;;  %v626_v38 = vadd.f32 %v616_v56, %v613_v52  ;;  %v627_v6 = vadd.f32 %v617_v13, %v612_v57  ;;  %v632_v8 = vmul.f32 4.0, %v1886_v27  ;;  %p1232_p13 = scmp.lt.s32.totalorder %s1957_s10, %s1230_s29 }
 0x121   : > { %v580_v35 = vsub.f32 %v575_v50, %v578_v30  ;;  %v638_v10 = vmul.f32 %v636_v24, %v1691_v3  ;;  %v633_v25 = vmul.f32 4.0, %v1888_v16 }
 0x122   : > { %v581_v14 = vsub.f32 %v576_v51, %v579_v58 }
 0x123   : > { %622 = vrot.lane.b32.xlu0 %v1886_v27, %s1384_s11  ;;  %v583_v17 = vmul.f32 %v582_v62, %v580_v35 }
 0x124   : > { %624 = vrot.lane.b32.xlu1 %v1888_v16, %s1384_s11  ;;  %v584_v60 = vmul.f32 %v582_v62, %v581_v14 }
 0x125   : > { %v585_v43 = vadd.f32 %v583_v17, %v1705_v4 }
 0x126   : > { %v586_v47 = vadd.f32 %v584_v60, %v1707_v5  ;;  %v688_v5 = vmul.f32 4.0, %v1862_v7 }
 0x127   : > { %v587_v34 = vmax.f32 %v585_v43, 0.0 }
 0x128   : > { %v588_v39 = vmax.f32 %v586_v47, 0.0 }
 0x129   : > { %v589_v63 = vmin.f32 %v587_v34, 1.0 }
 0x12a   : > { %v590_v59 = vmin.f32 %v588_v39, 1.0 }
 0x12b   : > { %591 = vst [vmem:[%s1929_s30] sm:$0xff] %v589_v63 }
 0x12c   : > { %592 = vst [vmem:[%s1929_s30 + $0x8] sm:$0xff] %v590_v59  ;;  %s1975_s30 = scalar_lea.sflag [#allocation12], %s328_s13 }
 0x189   : > { %v675_v9 = vpop.permute.xlu0 %674 }
 0x18a   : > { %v677_v61 = vpop.permute.xlu1 %676  ;;  %v684_v18 = vadd.f32 %v682_v33, %v675_v9 }
 0x18b   : > { %v685_v4 = vadd.f32 %v683_v42, %v677_v61 }
 0x18d   : > { %v619_v54 = vpop.permute.xlu0 %618 }
 0x18e   : > { %v621_v15 = vpop.permute.xlu1 %620  ;;  %v628_v26 = vadd.f32 %v626_v38, %v619_v54 }
 0x18f   : > { %v629_v55 = vadd.f32 %v627_v6, %v621_v15 }
 0x191   : > { %v679_v19 = vpop.permute.xlu0 %678 }
 0x192   : > { %v681_v29 = vpop.permute.xlu1 %680  ;;  %v686_v41 = vadd.f32 %v684_v18, %v679_v19 }
 0x193   : > { %v687_v23 = vadd.f32 %v685_v4, %v681_v29 }
 0x194   : > { %v690_v28 = vsub.f32 %v686_v41, %v688_v5 }
 0x195   : > { %v691_v31 = vsub.f32 %v687_v23, %v689_v22  ;;  %v623_v7 = vpop.permute.xlu0 %622 }
 0x196   : > { %v625_v21 = vpop.permute.xlu1 %624  ;;  %v695_v11 = vmul.f32 %v693_v36, %v690_v28  ;;  %v630_v53 = vadd.f32 %v628_v26, %v623_v7 }
 0x197   : > { %v696_v37 = vmul.f32 %v694_v20, %v691_v31  ;;  %v631_v42 = vadd.f32 %v629_v55, %v625_v21 }
 0x198   : > { %v697_v44 = vadd.f32 %v695_v11, %v1681_v0  ;;  %v634_v40 = vsub.f32 %v630_v53, %v632_v8 }
 0x199   : > { %v698_v33 = vadd.f32 %v696_v37, %v1689_v2  ;;  %v635_v46 = vsub.f32 %v631_v42, %v633_v25 }
 0x19a   : > { %v699_v27 = vmax.f32 %v697_v44, 0.0  ;;  %v639_v49 = vmul.f32 %v637_v32, %v634_v40 }
 0x19b   : > { %v700_v48 = vmax.f32 %v698_v33, 0.0  ;;  %v640_v50 = vmul.f32 %v638_v10, %v635_v46 }
 0x19c   : > { %v701_v0 = vmin.f32 %v699_v27, 1.0  ;;  %v641_v16 = vadd.f32 %v639_v49, %v1683_v1 }
 0x19d   : > { %v702_v2 = vmin.f32 %v700_v48, 1.0  ;;  %v642_v51 = vadd.f32 %v640_v50, %v1691_v3 }
 0x19e   : > { %703 = vst [vmem:[%s383_s25] sm:$0xff] %v701_v0  ;;  %v643_v45 = vmax.f32 %v641_v16, 0.0 }
 0x19f   : > { %704 = vst [vmem:[%s383_s25 + $0x8] sm:$0xff] %v702_v2  ;;  %v644_v52 = vmax.f32 %v642_v51, 0.0  ;;  %s1231_s25 = scalar_lea.vmem %s1230_s29, 512 }
 0x1a0   : > { %p1233_p11 = scmp.lt.s32.totalorder %s1231_s25, %s1225_s18 }
 0x1a2   : > { %p1234_p0 = por %p1233_p11, %p1232_p13 }
 0x1a4   : > { %p1235_p5 = pnand %p1234_p0, %p1228_p2 }
 0x1a6   : > { %1238 = shalt.err (!%p1235_p5)
}
 0x1a7   : > { %s1239_s12 = scalar_lea.hbm %s1949_s0, 256  ;;  %s1243_s11 = scalar_lea.hbm %s2086_s5, 512 }
 0x1a8   : > { %p1240_p3 = scmp.ne.s32.totalorder %s1949_s0, %s1239_s12  ;;  %p1244_p10 = scmp.lt.u32.totalorder %s1949_s0, %s2086_s5 }
 0x1a9   : > { %p1245_p8 = scmp.lt.u32.totalorder %s1243_s11, %s1239_s12  ;;  %p1247_p12 = scmp.lt.u32.totalorder %s1239_s12, %s1949_s0 }
 0x1aa   : > { %p1241_p6 = pnand %p1240_p3, %p2128_p4 }
 0x1ab   : > { %p1246_p7 = por %p1245_p8, %p1244_p10 }
 0x1ac   : > { %p1242_p9 = pneg %p1241_p6 }
 0x1ad   : > { %p1248_p1 = por %p1247_p12, %p1246_p7 }
 0x1af   : > { %p1249_p2 = pnand %p1248_p1, %p1242_p9 }
 0x1b1   : > { %1252 = shalt.err (!%p1249_p2)
}
 0x1b2   : > { %s1386_s9 = smov 128   ;;  %s1387_s7 = smov 8   ;;  %v645_v1 = vmin.f32 %v643_v45, 1.0  ;;  %v646_v3 = vmin.f32 %v644_v52, 1.0 }
 0x1b3   : > { %1020 = dma.vmem_to_hbm [thread:$0]  (%p2128_p4), %s1957_s10, 256, %s1949_s0, %s1975_s30, %s1386_s9, %s1386_s9, %s1387_s7  }
 0x1b4   : > { %s1253_s18 = scalar_lea.vmem %s1964_s20, 256  ;;  %s1388_s26 = smov [#allocation13]  }
 0x1b5   : > { %p1254_p13 = scmp.ne.s32.totalorder %s1964_s20, %s1253_s18  ;;  %s1257_s29 = sshll.u32 %s1388_s26, 4  ;;  %s1258_s29 = int_to_ptr.vmem [resolvable:$false] %s1257_s29 }
 0x1b6   : > { %s1259_s25 = scalar_lea.vmem %s1258_s29, 512  ;;  %p1260_p5 = scmp.lt.s32.totalorder %s1964_s20, %s1258_s29 }
 0x1b7   : > { %p1255_p11 = pnand %p1254_p13, %p2128_p4  ;;  %p1261_p3 = scmp.lt.s32.totalorder %s1259_s25, %s1253_s18 }
 0x1b9   : > { %p1256_p0 = pneg %p1255_p11  ;;  %p1262_p6 = por %p1261_p3, %p1260_p5 }
 0x1bb   : > { %p1263_p9 = pnand %p1262_p6, %p1256_p0 }
 0x1bd   : > { %1266 = shalt.err (!%p1263_p9)
}
 0x1be   : > { %s1267_s10 = scalar_lea.hbm %s1962_s8, 256  ;;  %s1271_s13 = scalar_lea.hbm %s2087_s6, 512 }
 0x1bf   : > { %p1268_p10 = scmp.ne.s32.totalorder %s1962_s8, %s1267_s10  ;;  %p1272_p12 = scmp.lt.u32.totalorder %s1962_s8, %s2087_s6 }
 0x1c0   : > { %p1273_p1 = scmp.lt.u32.totalorder %s1271_s13, %s1267_s10  ;;  %p1275_p13 = scmp.lt.u32.totalorder %s1267_s10, %s1962_s8 }
 0x1c1   : > { %p1269_p8 = pnand %p1268_p10, %p2128_p4 }
 0x1c2   : > { %p1274_p2 = por %p1273_p1, %p1272_p12 }
 0x1c3   : > { %p1270_p7 = pneg %p1269_p8 }
 0x1c4   : > { %p1276_p11 = por %p1275_p13, %p1274_p2 }
 0x1c6   : > { %p1277_p0 = pnand %p1276_p11, %p1270_p7 }
 0x1c8   : > { %1280 = shalt.err (!%p1277_p0)
}
 0x1c9   : > { %1021 = dma.vmem_to_hbm [thread:$0]  (%p2128_p4), %s1964_s20, 256, %s1962_s8, %s1975_s30, %s1386_s9, %s1386_s9, %s1387_s7  }
 0x1ca   : > { %647 = vst [vmem:[%s1952_s28] sm:$0xff] %v645_v1  ;;  %648 = vst [vmem:[%s1952_s28 + $0x8] sm:$0xff] %v646_v3  ;;  %s706_s24 = scalar_lea.sflag [#allocation4], %s1661_s19  ;;  %s1281_s2 = scalar_lea.vmem %s1971_s15, 256 }
 0x1cb   : > { %p1282_p5 = scmp.ne.s32.totalorder %s1971_s15, %s1281_s2  ;;  %s1389_s18 = smov [#allocation10]  }
 0x1cc   : > { %s1285_s26 = sshll.u32 %s1389_s18, 4  ;;  %s1286_s26 = int_to_ptr.vmem [resolvable:$false] %s1285_s26 }
 0x1cd   : > { %p1283_p3 = pnand %p1282_p5, %p2128_p4  ;;  %s1287_s29 = scalar_lea.vmem %s1286_s26, 512 }
 0x1ce   : > { %p1288_p9 = scmp.lt.s32.totalorder %s1971_s15, %s1286_s26  ;;  %p1289_p10 = scmp.lt.s32.totalorder %s1287_s29, %s1281_s2 }
 0x1cf   : > { %p1284_p6 = pneg %p1283_p3 }
 0x1d0   : > { %p1290_p8 = por %p1289_p10, %p1288_p9 }
 0x1d2   : > { %p1291_p7 = pnand %p1290_p8, %p1284_p6 }
 0x1d4   : > { %1294 = shalt.err (!%p1291_p7)
}
 0x1d5   : > { %s1295_s20 = scalar_lea.hbm %s1969_s27, 256  ;;  %s1299_s30 = scalar_lea.hbm %s2085_s4, 512 }
 0x1d6   : > { %p1296_p12 = scmp.ne.s32.totalorder %s1969_s27, %s1295_s20  ;;  %p1300_p13 = scmp.lt.u32.totalorder %s1969_s27, %s2085_s4 }
 0x1d7   : > { %p1301_p11 = scmp.lt.u32.totalorder %s1299_s30, %s1295_s20  ;;  %p1303_p5 = scmp.lt.u32.totalorder %s1295_s20, %s1969_s27 }
 0x1d8   : > { %p1297_p1 = pnand %p1296_p12, %p2128_p4 }
 0x1d9   : > { %p1302_p0 = por %p1301_p11, %p1300_p13 }
 0x1da   : > { %p1298_p2 = pneg %p1297_p1 }
 0x1db   : > { %p1304_p3 = por %p1303_p5, %p1302_p0 }
 0x1dd   : > { %p1305_p6 = pnand %p1304_p3, %p1298_p2 }
 0x1df   : > { %1308 = shalt.err (!%p1305_p6)
}
 0x1e0   : > { %1019 = dma.vmem_to_hbm [thread:$0]  (%p2128_p4), %s1971_s15, 256, %s1969_s27, %s706_s24, %s1386_s9, %s1386_s9, %s1387_s7  }
 0x1e1 PF: > { %s2129_s0 = sld [smem:[#allocation20_spill]]  ;;  %s776_s12 = sand.u32 1, %s1355_s21  }
 0x1e2   : > { %p2130_p9 = scmp.ne.s32.totalorder %s2116_s16, 0  ;;  %s777_s13 = scalar_lea.sflag [#allocation4], %s776_s12 }
 0x1e7   : > { %p2131_p10 = scmp.ge.s32.totalorder %s2129_s0, 2 }
 0x1e9   : > { %p1040_p8 = pnand %p2131_p10, %p2130_p9 }
 0x1eb   : > { %1346 = dma.done.wait (!%p1040_p8), %s777_s13, 256  }
 0x1ec   : > { %1348 = vsyncadd (!%p1040_p8), %s777_s13, 4294967040  ;;  %s2132_s14 = sadd.s32 4294967294, %s2129_s0  }
 0x1ed   : > { %s785_s17 = sand.u32 1, %s2132_s14  }
 0x1ee   : > { %s786_s11 = scalar_lea.sflag [#allocation12], %s785_s17 }
 0x1ef   : > { %1350 = dma.done.wait (!%p1040_p8), %s786_s11, 512  }
 0x1f0   : > { %1352 = vsyncadd (!%p1040_p8), %s786_s11, 4294966784  ;;  %s30_s26 = sadd.s32 1, %s2129_s0   ;;  %s2133_s19 = sld [smem:[#allocation22_spill]] }
 0x1f1   : > { %p27_p4 = scmp.ge.s32.totalorder %s30_s26, 4   ;;  %s2134_s24 = sld [smem:[#allocation19_spill]] }
 0x1f2   : > { %s2135_s25 = sld [smem:[#allocation21_spill]]  ;;  %s2136_s21 = smov %s1359_s22 }
 0x1f3   : > { %s2137_s22 = smov %s1363_s23  ;;  %29 = sbr.rel (!%p27_p4) target bundleno = 14 (0xe), region = 146 }
 0x1f6   : > { %s2138_s23 = smov %s2133_s19 }
 0x1fa   :  { %800 = vsyncpa [#allocation3], 1 }
 0x1fb   :  { %802 = vsyncpa [#allocation3 + $0x1], 1 }
 0x1fc   :  { %803 = vsyncpa [#allocation8], 1 }
 0x1fd   :  { %805 = vsyncpa [#allocation8 + $0x1], 1 }
 0x1fe   :  { %806 = vsyncpa [#allocation4], 1 }
 0x1ff   :  { %808 = vsyncpa [#allocation4 + $0x1], 1 }
 0x200   :  { %809 = vsyncpa [#allocation12], 1 }
 0x201   :  { %811 = vsyncpa [#allocation12 + $0x1], 1 }
 0x202   :  { %812 = vsyncpa [#allocation5], 1 }
 0x203   :  { %814 = vsyncpa [#allocation5 + $0x1], 1 }

</bundles_post_ra>
